<compile_context>
chip_gen: v5e
topology: v5e:2x2
jax: 0.10.0
libtpu: 0.0.40
codegen_flags: <defaults>
</compile_context>

<pallas_src>
import jax
import jax.numpy as jnp
from jax.experimental import pallas as pl
from jax.experimental.pallas import tpu as pltpu

_THRESHOLD = 0.5   # magnitude threshold for the synthetic fake-sparse mask
_LANES = 512       # lane-dense last dim (multiple of 128)
_ROW_ALIGN = 32    # lcm of sublane packing for f32(8) / bf16(16) / int8(32)


def _round_up(x, m):
    return ((x + m - 1) // m) * m


def _fake_sparse_mask_kernel(x_ref, out_ref, mask_ref):
    """Elementwise hot path: mask generation + fake-sparse apply."""
    x = x_ref[...]
    keep = jnp.abs(x) >= _THRESHOLD                       # generate_mask
    out_ref[...] = jnp.where(keep, x, jnp.zeros_like(x))  # forward (enabled)
    mask_ref[...] = keep.astype(mask_ref.dtype)


def _fake_sparse_kernel(x_ref, out_ref):
    """Out-only variant: forward(x) without materializing the mask."""
    x = x_ref[...]
    out_ref[...] = jnp.where(jnp.abs(x) >= _THRESHOLD, x, jnp.zeros_like(x))


def _pick_max_block_rows():
    """Per-generation max tile height (rows of 512 f32 lanes)."""
    try:
        kind = jax.devices()[0].device_kind.lower()
    except Exception:
        return 1024
    if "v6" in kind or "v7" in kind:
        return 2048   # 4 MiB/array blocks; fits the 32 MiB scoped-VMEM default
    return 1024       # v5e: stay under the 16 MiB scoped-VMEM default


def _choose_block_rows(rows, max_block_rows):
    """Pick a sublane-aligned tile height; >= 2 grid steps when possible."""
    if rows > max_block_rows:
        return max_block_rows
    # Split small/medium tensors into two blocks so both v7x TCs get work.
    return min(_round_up(pl.cdiv(rows, 2), _ROW_ALIGN), max_block_rows)


def fake_sparse_forward(x, fake_sparse_enabled=True, *, return_mask=True,
                        mask_dtype=jnp.int8):
    """Fake-sparse forward over an arbitrary-shape float array (e.g. NCHW).

    fake_sparse_enabled mirrors the uint8 buffer toggled by
    enable_fake_sparse / disable_fake_sparse; it must be a *static* Python
    bool/int here.
    # TODO(synk): if the enable flag becomes a traced value under jit, move
    # the enabled/disabled branch into lax.cond (or two jitted variants).

    Returns (out, mask) if return_mask else out.
    """
    if not bool(fake_sparse_enabled):
        # Disabled path: identity -- skip the kernel, no HBM traffic needed.
        if return_mask:
            return x, jnp.ones(x.shape, dtype=mask_dtype)
        return x

    orig_shape = x.shape
    total = x.size
    flat = x.reshape(-1)

    # Lane-dense [rows, 512] view; pad < 512 elements only when needed.
    rows = pl.cdiv(total, _LANES)
    padded = rows * _LANES
    if padded != total:
        flat = jnp.pad(flat, (0, padded - total))
    x2d = flat.reshape(rows, _LANES)

    block_rows = _choose_block_rows(rows, _pick_max_block_rows())
    grid = (pl.cdiv(rows, block_rows),)
    spec = pl.BlockSpec((block_rows, _LANES), lambda i: (i, 0))
    cparams = pltpu.CompilerParams(dimension_semantics=("parallel",))

    if return_mask:
        out2d, mask2d = pl.pallas_call(
            _fake_sparse_mask_kernel,
            out_shape=(
                jax.ShapeDtypeStruct((rows, _LANES), x.dtype),
                jax.ShapeDtypeStruct((rows, _LANES), mask_dtype),
            ),
            grid=grid,
            in_specs=[spec],
            out_specs=(spec, spec),
            compiler_params=cparams,
        )(x2d)
    else:
        out2d = pl.pallas_call(
            _fake_sparse_kernel,
            out_shape=jax.ShapeDtypeStruct((rows, _LANES), x.dtype),
            grid=grid,
            in_specs=[spec],
            out_specs=spec,
            compiler_params=cparams,
        )(x2d)
        mask2d = None

    def _unflatten(a2d):
        if padded != total:
            return a2d.reshape(-1)[:total].reshape(orig_shape)
        return a2d.reshape(orig_shape)   # identity-cost reshape

    out = _unflatten(out2d)
    if return_mask:
        return out, _unflatten(mask2d)
    return out


if __name__ == "__main__":
    key = jax.random.PRNGKey(0)

    # --- small NCHW case (total % 512 == 0, no padding) ---------------------
    x = jax.random.normal(key, (2, 4, 16, 16), dtype=jnp.float32)

    out, mask = fake_sparse_forward(x, True)
    out = jax.block_until_ready(out)
    mask = jax.block_until_ready(mask)

    ref_keep = jnp.abs(x) >= _THRESHOLD
    ref_mask_i8 = ref_keep.astype(jnp.int8)
    ref_out = x * ref_keep.astype(x.dtype)
    assert jnp.array_equal(out, ref_out)
    assert jnp.array_equal(mask, ref_mask_i8)

    # out-only variant (no mask writeback)
    out_only = jax.block_until_ready(fake_sparse_forward(x, True, return_mask=False))
    assert jnp.array_equal(out_only, ref_out)

    # disabled path (disable_fake_sparse) -> identity, kernel skipped
    out_dis, mask_dis = fake_sparse_forward(x, False)
    out_dis = jax.block_until_ready(out_dis)
    assert jnp.array_equal(out_dis, x)
    assert jnp.array_equal(mask_dis, jnp.ones(x.shape, dtype=jnp.int8))

    # --- shape whose total is NOT a multiple of 512: exercises the lane
    #     padding + ragged-block path -----------------------------------------
    key2 = jax.random.PRNGKey(1)
    x2 = jax.random.normal(key2, (2, 3, 5, 7), dtype=jnp.float32)
    out2, mask2 = fake_sparse_forward(x2, True)
    out2 = jax.block_until_ready(out2)
    mask2 = jax.block_until_ready(mask2)
    ref_keep2 = jnp.abs(x2) >= _THRESHOLD
    assert jnp.array_equal(out2, x2 * ref_keep2.astype(x2.dtype))
    assert jnp.array_equal(mask2, ref_keep2.astype(jnp.int8))

    # --- larger conv activation: total % 512 == 0 so the slab is copy-free,
    #     and rows (784) force a multi-step ragged grid ----------------------
    key3 = jax.random.PRNGKey(2)
    x3 = jax.random.normal(key3, (4, 32, 56, 56), dtype=jnp.float32)
    out3, mask3 = fake_sparse_forward(x3, True)
    out3 = jax.block_until_ready(out3)
    mask3 = jax.block_until_ready(mask3)
    ref_keep3 = jnp.abs(x3) >= _THRESHOLD
    assert jnp.array_equal(out3, x3 * ref_keep3.astype(x3.dtype))
    assert jnp.array_equal(mask3, ref_keep3.astype(jnp.int8))

    print("KERNEL_OK")
</pallas_src>

<mosaic_0001>
module attributes {stable_mosaic.version = 11 : i64} {
  func.func @_fake_sparse_mask_kernel(%arg0: i32, %arg1: memref<32x512xf32, #tpu.memory_space<vmem>>, %arg2: memref<32x512xf32, #tpu.memory_space<vmem>>, %arg3: memref<32x512xi8, #tpu.memory_space<vmem>>) attributes {dimension_semantics = [#tpu.dimension_semantics<parallel>], iteration_bounds = array<i64: 1>, scalar_prefetch = 0 : i64, scratch_operands = 0 : i64, tpu.core_type = #tpu.core_type<tc>, window_params = [{transform_indices = @transform_0, window_bounds = array<i64: 32, 512>}, {transform_indices = @transform_1, window_bounds = array<i64: 32, 512>}, {transform_indices = @transform_2, window_bounds = array<i64: 32, 512>}]} {
    %c0 = arith.constant 0 : index
    %c0_0 = arith.constant 0 : index
    %0 = vector.load %arg1[%c0, %c0_0] : memref<32x512xf32, #tpu.memory_space<vmem>>, vector<32x512xf32>
    %1 = math.absf %0 : vector<32x512xf32>
    %cst = arith.constant 5.000000e-01 : f32
    %2 = vector.broadcast %cst : f32 to vector<32x512xf32>
    %3 = arith.cmpf oge, %1, %2 : vector<32x512xf32>
    %cst_1 = arith.constant 0.000000e+00 : f32
    %4 = vector.broadcast %cst_1 : f32 to vector<32x512xf32>
    %5 = arith.select %3, %0, %4 : vector<32x512xi1>, vector<32x512xf32>
    %c0_2 = arith.constant 0 : index
    %c0_3 = arith.constant 0 : index
    %6 = vector.load %arg2[%c0_2, %c0_3] : memref<32x512xf32, #tpu.memory_space<vmem>>, vector<32x512xf32>
    tpu.vector_store %arg2[%c0_2, %c0_3], %5 {strides = array<i32>} : memref<32x512xf32, #tpu.memory_space<vmem>>, vector<32x512xf32>,
    %7 = arith.extui %3 : vector<32x512xi1> to vector<32x512xi8>
    %c0_4 = arith.constant 0 : index
    %c0_5 = arith.constant 0 : index
    %8 = vector.load %arg3[%c0_4, %c0_5] : memref<32x512xi8, #tpu.memory_space<vmem>>, vector<32x512xi8>
    tpu.vector_store %arg3[%c0_4, %c0_5], %7 {strides = array<i32>} : memref<32x512xi8, #tpu.memory_space<vmem>>, vector<32x512xi8>,
    return
  }
  func.func @transform_0(%arg0: i32) -> (i32, i32) {
    %c0_i32 = arith.constant 0 : i32
    %c0_i32_0 = arith.constant 0 : i32
    return %arg0, %c0_i32 : i32, i32
  }
  func.func @transform_1(%arg0: i32) -> (i32, i32) {
    %c0_i32 = arith.constant 0 : i32
    %c0_i32_0 = arith.constant 0 : i32
    return %arg0, %c0_i32 : i32, i32
  }
  func.func @transform_2(%arg0: i32) -> (i32, i32) {
    %c0_i32 = arith.constant 0 : i32
    %c0_i32_0 = arith.constant 0 : i32
    return %arg0, %c0_i32 : i32, i32
  }
}

</mosaic_0001>

<bundles_post_ra>
// kernel: tpu_custom_call.1
= control target key start
LH: loop header
LB: loop body
LE: loop exit
PB: predicated region body
PF: predicated region fallthrough
CT: control target
= control target key end

     0   :  { %8 = vsyncpa [#allocation3], 0  ;;  %s672_s0 = inlined_call_operand.hbm [shape: f32[4,512], index: 0, kind: input, shape index: {}]   ;;  %s673_s1 = inlined_call_operand.hbm [shape: f32[4,512], index: 1, kind: output, shape index: {0}]   ;;  %s674_s2 = inlined_call_operand.hbm [shape: s8[4,512], index: 2, kind: output, shape index: {1}]  }
   0x1   :  { %9 = vsyncpa [#allocation4], 0 }
   0x2   :  { %10 = vsyncpa [#allocation7], 0 }
   0x3   :  { %14 = vsyncadd [#allocation3], 1792  ;;  %s15_s11 = sshll.u32 %s672_s0, 4  ;;  %s390_s12 = smov [#allocation2]   ;;  %s16_s11 = int_to_ptr.hbm [resolvable:$true] %s15_s11 }
   0x4   :  { %s17_s13 = sshll.u32 %s390_s12, 4  ;;  %s391_s14 = smov 256   ;;  %s18_s13 = int_to_ptr.vmem [resolvable:$true] %s17_s13 }
   0x5   :  { %s392_s15 = smov 16  }
   0x6   :  { %23 = dma.hbm_to_vmem [thread:$0]  %s16_s11, 256, %s18_s13, [#allocation3], %s391_s14, %s391_s14, %s392_s15  }
   0x7   :  { %384 = dma.done.wait [#allocation3], 2048  }
   0x8   :  { %385 = vsyncadd [#allocation3], 4294965248  ;;  %v419_v0 = vld [vmem:[#allocation2] sm:$0xff]  ;;  %v421_v1 = vld [vmem:[#allocation2 + $0x8] sm:$0xff]  ;;  %v393_v15 = vmov 0  }
   0x9   :  { %v423_v2 = vld [vmem:[#allocation2 + $0x10] sm:$0xff]  ;;  %v46_v3 = vand.u32 2147483647, %v419_v0  ;;  %v47_v4 = vand.u32 2147483647, %v421_v1  ;;  %v427_v5 = vld [vmem:[#allocation2 + $0x18] sm:$0xff] }
   0xa   :  { %v429_v6 = vld [vmem:[#allocation2 + $0x20] sm:$0xff]  ;;  %v48_v7 = vand.u32 2147483647, %v423_v2  ;;  %v49_v8 = vand.u32 2147483647, %v427_v5  ;;  %v433_v9 = vld [vmem:[#allocation2 + $0x28] sm:$0xff] }
   0xb   :  { %v435_v10 = vld [vmem:[#allocation2 + $0x30] sm:$0xff]  ;;  %vm437_vm0 = vcmp.ge.f32.partialorder %v46_v3, 0.5  ;;  %vm441_vm1 = vcmp.ge.f32.partialorder %v47_v4, 0.5  ;;  %v50_v13 = vand.u32 2147483647, %v429_v6  ;;  %v461_v20 = vld [vmem:[#allocation2 + $0x38] sm:$0xff] }
   0xc   :  { %v51_v14 = vand.u32 2147483647, %v433_v9  ;;  %v110_v16 = vsel %vm437_vm0, 1, %v393_v15  ;;  %v111_v17 = vsel %vm441_vm1, 1, %v393_v15  ;;  %vm453_vm2 = vcmp.ge.f32.partialorder %v48_v7, 0.5  ;;  %v463_v21 = vld [vmem:[#allocation2 + $0x40] sm:$0xff] }
   0xd   :  { %vm457_vm3 = vcmp.ge.f32.partialorder %v49_v8, 0.5  ;;  %v126_v22 = vpack.c.b16 %v111_v17, %v110_v16  ;;  %v112_v23 = vsel %vm453_vm2, 1, %v393_v15  ;;  %vm471_vm4 = vcmp.ge.f32.partialorder %v50_v13, 0.5  ;;  %v475_v26 = vld [vmem:[#allocation2 + $0x48] sm:$0xff]  ;;  %v506_v42 = vld [vmem:[#allocation2 + $0x50] sm:$0xff]  ;;  %v512_v46 = vld [vmem:[#allocation2 + $0x58] sm:$0xff] }
   0xe   :  { %v113_v24 = vsel %vm457_vm3, 1, %v393_v15  ;;  %vm477_vm5 = vcmp.ge.f32.partialorder %v51_v14, 0.5  ;;  %v114_v29 = vsel %vm471_vm4, 1, %v393_v15  ;;  %v52_v30 = vand.u32 2147483647, %v435_v10  ;;  %v514_v47 = vld [vmem:[#allocation2 + $0x60] sm:$0xff] }
   0xf   :  { %v128_v27 = vpack.c.b16 %v113_v24, %v112_v23  ;;  %v127_v31 = vpack.c.b8 %v126_v22, %v126_v22  ;;  %v115_v32 = vsel %vm477_vm5, 1, %v393_v15  ;;  %v53_v33 = vand.u32 2147483647, %v461_v20  ;;  %v530_v58 = vld [vmem:[#allocation2 + $0x68] sm:$0xff]  ;;  %v537_v61 = vld [vmem:[#allocation2 + $0x70] sm:$0xff]  ;;  %v546_v4 = vld [vmem:[#allocation2 + $0x78] sm:$0xff] }
  0x10   :  { %v54_v34 = vand.u32 2147483647, %v463_v21  ;;  %v130_v36 = vpack.c.b16 %v115_v32, %v114_v29  ;;  %vm490_vm6 = vcmp.ge.f32.partialorder %v52_v30, 0.5  ;;  %v55_v38 = vand.u32 2147483647, %v475_v26 }
  0x11   :  { %v129_v35 = vpack.c.b8 %v128_v27, %v128_v27  ;;  %vm142_vm7 = vnez %v127_v31  ;;  %vm495_vm8 = vcmp.ge.f32.partialorder %v53_v33, 0.5  ;;  %v116_v40 = vsel %vm490_vm6, 1, %v393_v15 }
  0x12   :  { %vm502_vm9 = vcmp.ge.f32.partialorder %v54_v34, 0.5  ;;  %v150_v43 = vsel %vm142_vm7, 16843009, %v393_v15  ;;  %v131_v44 = vpack.c.b8 %v130_v36, %v130_v36  ;;  %v117_v45 = vsel %vm495_vm8, 1, %v393_v15 }
  0x13   :  { %vm143_vm10 = vnez %v129_v35  ;;  %159 = vst [vmem:[#allocation1] ss:$9 sm:$0xff] %v150_v43  ;;  %v132_v49 = vpack.c.b16 %v117_v45, %v116_v40  ;;  %vm517_vm11 = vcmp.ge.f32.partialorder %v55_v38, 0.5  ;;  %v118_v51 = vsel %vm502_vm9, 1, %v393_v15 }
  0x14   :  { %v151_v48 = vsel %vm143_vm10, 16843009, %v393_v15  ;;  %vm144_vm12 = vnez %v131_v44  ;;  %v119_v52 = vsel %vm517_vm11, 1, %v393_v15  ;;  %v56_v53 = vand.u32 2147483647, %v506_v42 }
  0x15   :  { %162 = vst [vmem:[#allocation1 + $0x1] ss:$9 sm:$0xff] %v151_v48  ;;  %v152_v54 = vsel %vm144_vm12, 16843009, %v393_v15  ;;  %v133_v55 = vpack.c.b8 %v132_v49, %v132_v49  ;;  %v134_v56 = vpack.c.b16 %v119_v52, %v118_v51  ;;  %v57_v57 = vand.u32 2147483647, %v512_v46 }
  0x16   :  { %165 = vst [vmem:[#allocation1 + $0x2] ss:$9 sm:$0xff] %v152_v54  ;;  %vm532_vm13 = vcmp.ge.f32.partialorder %v56_v53, 0.5  ;;  %v58_v60 = vand.u32 2147483647, %v514_v47  ;;  %v702_v24 = vmov 0 }
  0x17   :  { %vm145_vm14 = vnez %v133_v55  ;;  %v135_v62 = vpack.c.b8 %v134_v56, %v134_v56  ;;  %vm539_vm15 = vcmp.ge.f32.partialorder %v57_v57, 0.5  ;;  %v120_v3 = vsel %vm532_vm13, 1, %v393_v15 }
  0x18   :  { %v153_v7 = vsel %vm145_vm14, 16843009, %v393_v15  ;;  %v121_v8 = vsel %vm539_vm15, 1, %v393_v15  ;;  %v59_v13 = vand.u32 2147483647, %v530_v58  ;;  %vm553_vm7 = vcmp.ge.f32.partialorder %v58_v60, 0.5 }
  0x19   :  { %168 = vst [vmem:[#allocation1 + $0x3] ss:$9 sm:$0xff] %v153_v7  ;;  %vm146_vm10 = vnez %v135_v62  ;;  %v136_v16 = vpack.c.b16 %v121_v8, %v120_v3  ;;  %v122_v17 = vsel %vm553_vm7, 1, %v393_v15  ;;  %v60_v22 = vand.u32 2147483647, %v537_v61 }
  0x1a   :  { %v154_v23 = vsel %vm146_vm10, 16843009, %v393_v15  ;;  %vm562_vm12 = vcmp.ge.f32.partialorder %v59_v13, 0.5  ;;  %v61_v27 = vand.u32 2147483647, %v546_v4  ;;  %v78_v32 = vsel %vm437_vm0, %v419_v0, 0.0 }
  0x1b   :  { %v703_v24 = vsel %vm562_vm12, 4294967295, %v702_v24  ;;  %171 = vst [vmem:[#allocation1 + $0x4] ss:$9 sm:$0xff] %v154_v23  ;;  %v137_v29 = vpack.c.b8 %v136_v16, %v136_v16  ;;  %v123_v30 = vsel %vm562_vm12, 1, %v393_v15  ;;  %vm570_vm14 = vcmp.ge.f32.partialorder %v60_v22, 0.5 }
  0x1c   :  { %v138_v33 = vpack.c.b16 %v123_v30, %v122_v17  ;;  %vm577_vm10 = vcmp.ge.f32.partialorder %v61_v27, 0.5  ;;  %v124_v35 = vsel %vm570_vm14, 1, %v393_v15  ;;  %94 = vst [vmem:[#allocation5] sm:$0xff] %v78_v32  ;;  %v79_v36 = vsel %vm441_vm1, %v421_v1, 0.0 }
  0x1d   :  { %vm147_vm12 = vnez %v137_v29  ;;  %v125_v11 = vsel %vm577_vm10, 1, %v393_v15  ;;  %95 = vst [vmem:[#allocation5 + $0x8] sm:$0xff] %v79_v36  ;;  %v80_v0 = vsel %vm453_vm2, %v423_v2, 0.0  ;;  %v81_v38 = vsel %vm457_vm3, %v427_v5, 0.0 }
  0x1e   :  { %v155_v40 = vsel %vm147_vm12, 16843009, %v393_v15  ;;  %v139_v43 = vpack.c.b8 %v138_v33, %v138_v33  ;;  %v140_v44 = vpack.c.b16 %v125_v11, %v124_v35  ;;  %96 = vst [vmem:[#allocation5 + $0x10] sm:$0xff] %v80_v0  ;;  %v82_v1 = vsel %vm471_vm4, %v429_v6, 0.0 }
  0x1f   :  { %174 = vst [vmem:[#allocation1 + $0x5] ss:$9 sm:$0xff] %v155_v40  ;;  %v83_v2 = vsel %vm477_vm5, %v433_v9, 0.0  ;;  %v84_v5 = vsel %vm490_vm6, %v435_v10, 0.0  ;;  %v85_v6 = vsel %vm495_vm8, %v461_v20, 0.0  ;;  %v86_v9 = vsel %vm502_vm9, %v463_v21, 0.0 }
  0x20   :  { %vm148_vm0 = vnez %v139_v43  ;;  %v141_v12 = vpack.c.b8 %v140_v44, %v140_v44  ;;  %97 = vst [vmem:[#allocation5 + $0x18] sm:$0xff] %v81_v38  ;;  %v87_v25 = vsel %vm517_vm11, %v475_v26, 0.0  ;;  %v88_v10 = vsel %vm532_vm13, %v506_v42, 0.0 }
  0x21   :  { %v156_v18 = vsel %vm148_vm0, 16843009, %v393_v15  ;;  %98 = vst [vmem:[#allocation5 + $0x20] sm:$0xff] %v82_v1  ;;  %vm200_vm2 = vcmask 1040384   ;;  %v89_v20 = vsel %vm539_vm15, %v512_v46, 0.0  ;;  %vm204_vm3 = vcmask 1042434  }
  0x22   :  { %177 = vst [vmem:[#allocation1 + $0x6] ss:$9 sm:$0xff] %v156_v18  ;;  %vm149_vm1 = vnez %v141_v12  ;;  %vm208_vm4 = vcmask 1041408   ;;  %v90_v21 = vsel %vm553_vm7, %v514_v47, 0.0  ;;  %vm708_vm5 = vnez %v703_v24 }
  0x23   :  { %v157_v19 = vsel %vm149_vm1, 16843009, %v393_v15  ;;  %99 = vst [vmem:[#allocation5 + $0x28] sm:$0xff] %v83_v2  ;;  %v91_v26 = vsel %vm708_vm5, %v530_v58, 0.0  ;;  %v92_v28 = vsel %vm570_vm14, %v537_v61, 0.0  ;;  %v93_v37 = vsel %vm577_vm10, %v546_v4, 0.0 }
  0x24   :  { %180 = vst [vmem:[#allocation1 + $0x7] ss:$9 sm:$0xff] %v157_v19  ;;  %vm211_vm6 = vcmask 1041409   ;;  %vm213_vm8 = vcmask 1043459   ;;  %vm215_vm9 = vcmask 1042433   ;;  %vm220_vm11 = vcmask 1044484  }
  0x25   :  { %100 = vst [vmem:[#allocation5 + $0x30] sm:$0xff] %v84_v5  ;;  %vm236_vm5 = vcmask 1045508   ;;  %vm241_vm15 = vcmask 1046528   ;;  %vm243_vm12 = vcmask 1046533   ;;  %vm249_vm7 = vcmask 1045504  }
  0x26   :  { %101 = vst [vmem:[#allocation5 + $0x38] sm:$0xff] %v85_v6  ;;  %vm255_vm13 = vcmask 1046529  }
  0x27   :  { %102 = vst [vmem:[#allocation5 + $0x40] sm:$0xff] %v86_v9 }
  0x28   :  { %103 = vst [vmem:[#allocation5 + $0x48] sm:$0xff] %v87_v25 }
  0x29   :  { %104 = vst [vmem:[#allocation5 + $0x50] sm:$0xff] %v88_v10 }
  0x2a   :  { %105 = vst [vmem:[#allocation5 + $0x58] sm:$0xff] %v89_v20 }
  0x2b   :  { %v183_v39 = vld [vmem:[#allocation1 + $0x9] sm:$0xff]  ;;  %v185_v41 = vld [vmem:[#allocation1 + $0x12] sm:$0xff]  ;;  %v187_v42 = vld [vmem:[#allocation1 + $0x1b] sm:$0xff]  ;;  %106 = vst [vmem:[#allocation5 + $0x60] sm:$0xff] %v90_v21 }
  0x2c   :  { %vm190_vm0 = vnez %v183_v39  ;;  %vm191_vm1 = vnez %v185_v41  ;;  %vm192_vm14 = vnez %v187_v42  ;;  %v181_v45 = vld [vmem:[#allocation1] sm:$0xff]  ;;  %107 = vst [vmem:[#allocation5 + $0x68] sm:$0xff] %v91_v26 }
  0x2d   :  { %v194_v46 = vsel %vm190_vm0, 16843009, %v393_v15  ;;  %v195_v47 = vsel %vm191_vm1, 16843009, %v393_v15  ;;  %v196_v48 = vsel %vm192_vm14, 16843009, %v393_v15  ;;  %vm189_vm10 = vnez %v181_v45 }
  0x2e   :  { %v197_v49 = vrot.slane %v194_v46, 7  ;;  %v198_v50 = vrot.slane %v195_v47, 6  ;;  %v199_v51 = vrot.slane %v196_v48, 5  ;;  %108 = vst [vmem:[#allocation5 + $0x70] sm:$0xff] %v92_v28  ;;  %v193_v52 = vsel %vm189_vm10, 16843009, %v393_v15 }
  0x2f   :  { %109 = vst [vmem:[#allocation5 + $0x78] sm:$0xff] %v93_v37  ;;  %vm709_vm0 = vcmask 1043458   ;;  %vm710_vm1 = vcmask 1045509   ;;  %vm711_vm14 = vcmask 1044483  }
  0x30   :  { %v203_v53 = vsel %vm200_vm2, %v193_v52, %v197_v49  ;;  %v207_v54 = vsel %vm204_vm3, %v198_v50, %v199_v51  ;;  %v212_v55 = vsel %vm211_vm6, %v193_v52, %v197_v49  ;;  %v214_v56 = vsel %vm213_vm8, %v198_v50, %v199_v51 }
  0x31   :  { %v209_v57 = vsel %vm208_vm4, %v203_v53, %v207_v54  ;;  %v216_v58 = vsel %vm215_vm9, %v212_v55, %v214_v56  ;;  %v219_v59 = vsel %vm204_vm3, %v193_v52, %v197_v49  ;;  %v221_v15 = vsel %vm220_vm11, %v198_v50, %v199_v51  ;;  %vm713_vm3 = vmmov %vm710_vm1 }
  0x32   :  { %259 = vst [vmem:[#allocation6] sm:$0xf] %v209_v57  ;;  %v218_v60 = vrot.slane %v216_v58, 1  ;;  %v223_v61 = vsel %vm709_vm0, %v219_v59, %v221_v15  ;;  %v226_v62 = vsel %vm213_vm8, %v193_v52, %v197_v49  ;;  %v228_v63 = vsel %vm710_vm1, %v198_v50, %v199_v51 }
  0x33   :  { %v225_v3 = vrot.slane %v223_v61, 2  ;;  %v230_v4 = vsel %vm711_vm14, %v226_v62, %v228_v63  ;;  %v233_v7 = vsel %vm220_vm11, %v193_v52, %v197_v49  ;;  %vm712_vm4 = vcmask 1046534  }
  0x34   :  { %v235_v8 = vsel %vm712_vm4, %v198_v50, %v199_v51  ;;  %260 = vst [vmem:[#allocation6 + $0x4] sm:$0xf] %v218_v60  ;;  %v232_v13 = vrot.slane %v230_v4, 3  ;;  %v240_v16 = vsel %vm713_vm3, %v193_v52, %v197_v49  ;;  %v242_v17 = vsel %vm241_vm15, %v199_v51, %v198_v50  ;;  %vm714_vm8 = vmmov %vm712_vm4 }
  0x35   :  { %v237_v14 = vsel %vm236_vm5, %v233_v7, %v235_v8  ;;  %261 = vst [vmem:[#allocation6 + $0x8] sm:$0xf] %v225_v3  ;;  %v244_v23 = vsel %vm243_vm12, %v240_v16, %v242_v17  ;;  %v247_v24 = vsel %vm714_vm8, %v193_v52, %v197_v49  ;;  %v248_v27 = vsel %vm200_vm2, %v198_v50, %v199_v51 }
  0x36   :  { %v239_v22 = vrot.slane %v237_v14, 4  ;;  %262 = vst [vmem:[#allocation6 + $0xc] sm:$0xf] %v232_v13  ;;  %v246_v29 = vrot.slane %v244_v23, 5  ;;  %v250_v30 = vsel %vm249_vm7, %v248_v27, %v247_v24  ;;  %v253_v31 = vsel %vm241_vm15, %v197_v49, %v193_v52 }
  0x37   :  { %v254_v32 = vsel %vm211_vm6, %v198_v50, %v199_v51  ;;  %v252_v33 = vrot.slane %v250_v30, 6 }
  0x38   :  { %263 = vst [vmem:[#allocation6 + $0x10] sm:$0xf] %v239_v22  ;;  %v256_v34 = vsel %vm255_vm13, %v254_v32, %v253_v31 }
  0x39   :  { %264 = vst [vmem:[#allocation6 + $0x14] sm:$0xf] %v246_v29  ;;  %v258_v35 = vrot.slane %v256_v34, 7 }
  0x3a   :  { %265 = vst [vmem:[#allocation6 + $0x18] sm:$0xf] %v252_v33 }
  0x3b   :  { %266 = vst [vmem:[#allocation6 + $0x1c] sm:$0xf] %v258_v35 }
  0x3c   :  { %270 = vsyncadd [#allocation4], 1792  ;;  %s273_s17 = sshll.u32 %s673_s1, 4  ;;  %s394_s18 = smov [#allocation5]   ;;  %s274_s17 = int_to_ptr.hbm [resolvable:$true] %s273_s17 }
  0x3d   :  { %s271_s19 = sshll.u32 %s394_s18, 4  ;;  %s272_s19 = int_to_ptr.vmem [resolvable:$true] %s271_s19 }
  0x3e   :  { %279 = dma.vmem_to_hbm [thread:$0]  %s272_s19, 256, %s274_s17, [#allocation4], %s391_s14, %s391_s14, %s392_s15  }
  0x3f   :  { %283 = vsyncadd [#allocation7], 448  ;;  %s286_s22 = sshll.u32 %s674_s2, 4  ;;  %s395_s23 = smov [#allocation6]   ;;  %s287_s22 = int_to_ptr.hbm [resolvable:$true] %s286_s22 }
  0x40   :  { %s284_s24 = sshll.u32 %s395_s23, 4  ;;  %s396_s25 = smov 64   ;;  %s285_s24 = int_to_ptr.vmem [resolvable:$true] %s284_s24 }
  0x41   :  { %s397_s26 = smov 4  }
  0x42   :  { %292 = dma.vmem_to_hbm [thread:$0]  %s285_s24, 64, %s287_s22, [#allocation7], %s396_s25, %s396_s25, %s397_s26  }
  0x43   :  { %386 = dma.done.wait [#allocation4], 2048  }
  0x44   :  { %387 = vsyncadd [#allocation4], 4294965248 }
  0x45   :  { %388 = dma.done.wait [#allocation7], 512  }
  0x46   :  { %389 = vsyncadd [#allocation7], 4294966784 }
  0x47   :  { %301 = vsyncpa [#allocation3], 1 }
  0x48   :  { %302 = vsyncpa [#allocation4], 1 }
  0x49   :  { %303 = vsyncpa [#allocation7], 1 }

</bundles_post_ra>
